<compile_context>
chip_gen: v6e
topology: v6e:2x2x1
jax: 0.10.0
libtpu: 0.0.40
codegen_flags: <defaults>
</compile_context>

<pallas_src>
import functools
import math

import jax
import jax.numpy as jnp
from jax import lax
from jax.experimental import pallas as pl
from jax.experimental.pallas import tpu as pltpu


def _first_deriv_l1_kernel(mask_ref, x_ref, y_ref, o_ref, *, tile_m, M, ragged):
    # d1 is linear: d1(x) - d1(y) == d1(x - y).  Native-dtype VPU work.
    d = x_ref[...] - y_ref[...]
    C = d.shape[-1]
    # shifted[q] = d[q + 2] within each packed kernel row; the wrap-around
    # lanes fall exactly on positions the lane mask zeroes out.
    shifted = pltpu.roll(d, C - 2, 1)
    diff = jnp.abs(shifted - d).astype(jnp.float32)
    # Hoisted lane-validity mask: a single broadcast multiply per vreg.
    # (The derivative's /2 is folded into inv_denom outside the kernel.)
    contrib = diff * mask_ref[...]
    if ragged:
        # Only traced when the last block actually reads past M.  OOB rows are
        # uninitialized, so a select (not a multiply) is required here.
        i = pl.program_id(0)
        row = lax.broadcasted_iota(jnp.int32, contrib.shape, 0)
        contrib = jnp.where(row < M - i * tile_m, contrib, 0.0)
    # Per-tile lane/sublane-dense partial sums: the reshape aligns with the
    # (8, 128) vreg tiling (free) and the axis-0 sum is pure VPU adds.  The
    # cross-lane reduce is deferred to the tiny host-side finalize.
    o_ref[0] = jnp.sum(contrib.reshape(tile_m // 8, 8, C), axis=0)


def first_derivative_l1_loss(inp: jax.Array, tgt: jax.Array,
                             *, max_tile_bytes: int = 8 * 1024 * 1024) -> jax.Array:
    assert inp.shape == tgt.shape
    L = inp.shape[-1]
    assert L > 2, "first derivative needs last dim > 2"

    R = 1
    for s in inp.shape[:-1]:
        R *= s

    # Lane-dense packing: fold G consecutive logical rows into one kernel row
    # so the lane dim is a multiple of 128.  Pick the SMALLEST valid G so the
    # sublane (row) dimension stays long (pipelining / megacore sharding).
    g0 = 128 // math.gcd(L, 128)
    G = 1
    if L % 128 != 0:
        g = g0
        while g <= R:
            if R % g == 0:
                G = g
                break
            g += g0
    C = G * L
    M = R // G

    x2 = inp.reshape(M, C)   # no dtype cast: HBM traffic stays at native width
    y2 = tgt.reshape(M, C)

    # Lane-validity mask, built once outside the kernel (tiny constant input).
    lane = jnp.arange(C, dtype=jnp.int32)
    lane_mask = ((lane % L) < (L - 2)).astype(jnp.float32).reshape(1, C)

    itemsize = jnp.dtype(inp.dtype).itemsize

    # Generation-aware tile budget: keep 2 inputs x 2 pipeline buffers within
    # ~60% of physical VMEM (v7x: 64 MiB; v5e/v6e: 128 MiB).
    try:
        vmem_cap = int(pltpu.get_tpu_info().vmem_capacity_bytes)
    except Exception:
        vmem_cap = 64 * 1024 * 1024        # conservative (v7x per-TC)
    max_tile_bytes = min(max_tile_bytes, (vmem_cap * 6 // 10) // 4)

    budget_rows = max(8, (max_tile_bytes // (C * itemsize)) // 8 * 8)
    m_ceil = ((M + 7) // 8) * 8
    tile_m = min(m_ceil, budget_rows)
    # Prefer a tile_m that divides M exactly (no ragged tail -> no per-step
    # row mask), without shrinking below half the bandwidth budget.
    if M % tile_m != 0 and M % 8 == 0:
        t = tile_m
        while t >= max(8, tile_m // 2):
            if M % t == 0:
                tile_m = t
                break
            t -= 8
    num_tiles = (M + tile_m - 1) // tile_m
    ragged = (num_tiles * tile_m != M)

    n_valid = R * (L - 2)
    inv_denom = 1.0 / (2.0 * n_valid)      # folds the derivative's /2 into the mean

    tile_bytes = tile_m * C * itemsize
    vmem_limit = 4 * tile_bytes + 2 * 9 * C * 4 + (2 << 20)
    vmem_limit = int(min(max(vmem_limit, 16 << 20), vmem_cap))

    kernel = functools.partial(_first_deriv_l1_kernel,
                               tile_m=tile_m, M=M, ragged=ragged)

    cost = pl.CostEstimate(
        flops=6 * R * L,
        transcendentals=0,
        bytes_accessed=2 * R * L * itemsize + num_tiles * 8 * C * 4 + C * 4,
    )

    partials = pl.pallas_call(
        kernel,
        out_shape=jax.ShapeDtypeStruct((num_tiles, 8, C), jnp.float32),
        grid=(num_tiles,),
        in_specs=[
            pl.BlockSpec((1, C), lambda i: (0, 0)),          # lane mask (constant block)
            pl.BlockSpec((tile_m, C), lambda i: (i, 0)),     # input rows
            pl.BlockSpec((tile_m, C), lambda i: (i, 0)),     # target rows
        ],
        out_specs=pl.BlockSpec((1, 8, C), lambda i: (i, 0, 0)),
        compiler_params=pltpu.CompilerParams(
            # No cross-tile carried state -> the row axis is truly parallel
            # (shards across v7x's two TensorCores; no-op on v5e/v6e).
            dimension_semantics=("parallel",),
            vmem_limit_bytes=vmem_limit,
        ),
        cost_estimate=cost,
    )(lane_mask, x2, y2)

    # Tiny finalize in plain JAX: one cross-lane reduce + the mean scale.
    return jnp.sum(partials) * jnp.float32(inv_denom)


def _reference(inp, tgt):
    def d1(a):
        return (a[..., 2:] - a[..., :-2]) / 2.0
    return jnp.mean(jnp.abs(d1(inp) - d1(tgt)))


if __name__ == "__main__":
    key = jax.random.PRNGKey(0)
    k1, k2, k3, k4 = jax.random.split(key, 4)

    # NCHW-style input; derivative taken along the last (W) axis.
    x = jax.random.normal(k1, (2, 4, 16, 16), dtype=jnp.float32)
    y = jax.random.normal(k2, (2, 4, 16, 16), dtype=jnp.float32)
    loss = first_derivative_l1_loss(x, y)
    jax.block_until_ready(loss)
    ref = _reference(x, y)
    assert jnp.allclose(loss, ref, rtol=1e-5, atol=1e-6), (loss, ref)

    # Second check: non-dividing row count + tiny tile budget exercises the
    # multi-tile parallel grid, per-tile partial outputs and the ragged-tail
    # row mask.
    a = jax.random.normal(k3, (41, 128), dtype=jnp.float32)
    b = jax.random.normal(k4, (41, 128), dtype=jnp.float32)
    loss2 = first_derivative_l1_loss(a, b, max_tile_bytes=4096)
    jax.block_until_ready(loss2)
    ref2 = _reference(a, b)
    assert jnp.allclose(loss2, ref2, rtol=1e-5, atol=1e-6), (loss2, ref2)

    print("KERNEL_OK")
</pallas_src>

<mosaic_0001>
module attributes {stable_mosaic.version = 11 : i64} {
  func.func @_first_deriv_l1_kernel(%arg0: i32, %arg1: memref<1x128xf32, #tpu.memory_space<vmem>>, %arg2: memref<16x128xf32, #tpu.memory_space<vmem>>, %arg3: memref<16x128xf32, #tpu.memory_space<vmem>>, %arg4: memref<1x8x128xf32, #tpu.memory_space<vmem>>) attributes {dimension_semantics = [#tpu.dimension_semantics<parallel>], iteration_bounds = array<i64: 1>, scalar_prefetch = 0 : i64, scratch_operands = 0 : i64, tpu.core_type = #tpu.core_type<tc>, window_params = [{pipeline_mode = #tpu.pipeline_mode<synchronous>, transform_indices = @transform_0, window_bounds = array<i64: 1, 128>}, {transform_indices = @transform_1, window_bounds = array<i64: 16, 128>}, {transform_indices = @transform_2, window_bounds = array<i64: 16, 128>}, {transform_indices = @transform_3, window_bounds = array<i64: 1, 8, 128>}]} {
    %c0 = arith.constant 0 : index
    %c0_0 = arith.constant 0 : index
    %0 = vector.load %arg2[%c0, %c0_0] : memref<16x128xf32, #tpu.memory_space<vmem>>, vector<16x128xf32>
    %c0_1 = arith.constant 0 : index
    %c0_2 = arith.constant 0 : index
    %1 = vector.load %arg3[%c0_1, %c0_2] : memref<16x128xf32, #tpu.memory_space<vmem>>, vector<16x128xf32>
    %2 = arith.subf %0, %1 : vector<16x128xf32>
    %c126_i32 = arith.constant 126 : i32
    %3 = tpu.dynamic_rotate %2 by %c126_i32 dim 1 : vector<16x128xf32>, i32 -> vector<16x128xf32>
    %4 = arith.subf %3, %2 : vector<16x128xf32>
    %5 = math.absf %4 : vector<16x128xf32>
    %c0_3 = arith.constant 0 : index
    %c0_4 = arith.constant 0 : index
    %6 = vector.load %arg1[%c0_3, %c0_4] : memref<1x128xf32, #tpu.memory_space<vmem>>, vector<1x128xf32>
    %7 = vector.broadcast %6 : vector<1x128xf32> to vector<16x128xf32>
    %8 = arith.mulf %5, %7 : vector<16x128xf32>
    %9 = vector.shape_cast %8 : vector<16x128xf32> to vector<2x8x128xf32>
    %cst = arith.constant dense<0.000000e+00> : vector<8x128xf32>
    %10 = vector.multi_reduction <add>, %9, %cst [0] : vector<2x8x128xf32> to vector<8x128xf32>
    %c0_5 = arith.constant 0 : index
    %c0_6 = arith.constant 0 : index
    %c0_7 = arith.constant 0 : index
    %11 = vector.load %arg4[%c0_5, %c0_6, %c0_7] : memref<1x8x128xf32, #tpu.memory_space<vmem>>, vector<1x8x128xf32>
    %12 = vector.shape_cast %11 : vector<1x8x128xf32> to vector<8x128xf32>
    %13 = vector.shape_cast %10 : vector<8x128xf32> to vector<1x8x128xf32>
    tpu.vector_store %arg4[%c0_5, %c0_6, %c0_7], %13 {strides = array<i32>} : memref<1x8x128xf32, #tpu.memory_space<vmem>>, vector<1x8x128xf32>,
    return
  }
  func.func @transform_0(%arg0: i32) -> (i32, i32) {
    %c0_i32 = arith.constant 0 : i32
    %c0_i32_0 = arith.constant 0 : i32
    %c0_i32_1 = arith.constant 0 : i32
    return %c0_i32, %c0_i32_0 : i32, i32
  }
  func.func @transform_1(%arg0: i32) -> (i32, i32) {
    %c0_i32 = arith.constant 0 : i32
    %c0_i32_0 = arith.constant 0 : i32
    return %arg0, %c0_i32 : i32, i32
  }
  func.func @transform_2(%arg0: i32) -> (i32, i32) {
    %c0_i32 = arith.constant 0 : i32
    %c0_i32_0 = arith.constant 0 : i32
    return %arg0, %c0_i32 : i32, i32
  }
  func.func @transform_3(%arg0: i32) -> (i32, i32, i32) {
    %c0_i32 = arith.constant 0 : i32
    %c0_i32_0 = arith.constant 0 : i32
    %c0_i32_1 = arith.constant 0 : i32
    return %arg0, %c0_i32, %c0_i32_0 : i32, i32, i32
  }
}

</mosaic_0001>

<bundles_post_ra>
// kernel: tpu_custom_call.1
= control target key start
LH: loop header
LB: loop body
LE: loop exit
PB: predicated region body
PF: predicated region fallthrough
CT: control target
= control target key end

     0   :  { %8 = vsyncpa [#allocation3], 0  ;;  %s228_s0 = inlined_call_operand.hbm [shape: f32[1,128], index: 0, kind: input, shape index: {}]   ;;  %s229_s1 = inlined_call_operand.hbm [shape: f32[16,128], index: 1, kind: input, shape index: {}]   ;;  %s230_s2 = inlined_call_operand.hbm [shape: f32[16,128], index: 2, kind: input, shape index: {}]   ;;  %s231_s3 = inlined_call_operand.hbm [shape: f32[1,8,128], index: 3, kind: output, shape index: {}]  }
   0x1   :  { %9 = vsyncpa [#allocation6], 0 }
   0x2   :  { %10 = vsyncpa [#allocation4], 0  ;;  %s189_s12 = smov [#allocation5]  }
   0x3   :  { %s26_s13 = sshll.u32 %s189_s12, 4  ;;  %s27_s13 = int_to_ptr.vmem [resolvable:$true] %s26_s13 }
   0x4   :  { %s111_s14 = scalar_lea.vmem %s27_s13, 256  ;;  %p116_p1 = scmp.lt.s32.totalorder %s27_s13, %s27_s13 }
   0x5   :  { %p112_p0 = scmp.ne.s32.totalorder %s27_s13, %s111_s14  ;;  %p117_p2 = scmp.lt.s32.totalorder %s111_s14, %s111_s14 }
   0x7   :  { %p118_p3 = por %p117_p2, %p116_p1 }
   0x9   :  { %p119_p4 = pnand %p118_p3, %p112_p0 }
   0xb   :  { %122 = shalt.err (!%p119_p4)
}
   0xc   :  { %s190_s15 = smov 128   ;;  %s191_s16 = smov 8  }
   0xd   :  { %32 = dma.hbm_to_vmem [thread:$0]  %s229_s1, 256, %s27_s13, [#allocation6], %s190_s15, %s190_s15, %s191_s16  }
   0xe   :  { %s192_s19 = smov [#allocation2]   ;;  %s193_s21 = smov [#allocation7]  }
   0xf   :  { %s17_s20 = sshll.u32 %s192_s19, 4  ;;  %s38_s22 = sshll.u32 %s193_s21, 4  ;;  %s18_s20 = int_to_ptr.vmem [resolvable:$true] %s17_s20  ;;  %s39_s22 = int_to_ptr.vmem [resolvable:$true] %s38_s22 }
  0x10   :  { %s131_s23 = scalar_lea.vmem %s18_s20, 16  ;;  %s135_s24 = scalar_lea.vmem %s18_s20, 32 }
  0x11   :  { %p132_p5 = scmp.ne.s32.totalorder %s18_s20, %s131_s23  ;;  %p136_p6 = scmp.lt.s32.totalorder %s18_s20, %s18_s20 }
  0x12   :  { %p137_p7 = scmp.lt.s32.totalorder %s135_s24, %s131_s23 }
  0x14   :  { %p138_p8 = por %p137_p7, %p136_p6 }
  0x16   :  { %p139_p9 = pnand %p138_p8, %p132_p5 }
  0x18   :  { %142 = shalt.err (!%p139_p9)
}
  0x19   :  { %20 = dma.hbm_to_vmem [thread:$0]  %s228_s0, 16, %s18_s20, [#allocation3]  }
  0x1a   :  { %s151_s27 = scalar_lea.vmem %s39_s22, 256  ;;  %p156_p11 = scmp.lt.s32.totalorder %s39_s22, %s39_s22 }
  0x1b   :  { %p152_p10 = scmp.ne.s32.totalorder %s39_s22, %s151_s27  ;;  %p157_p12 = scmp.lt.s32.totalorder %s151_s27, %s151_s27 }
  0x1d   :  { %p158_p13 = por %p157_p12, %p156_p11 }
  0x1f   :  { %p159_p0 = pnand %p158_p13, %p152_p10 }
  0x21   :  { %162 = shalt.err (!%p159_p0)
}
  0x22   :  { %44 = dma.hbm_to_vmem [thread:$0]  %s230_s2, 256, %s39_s22, [#allocation6], %s190_s15, %s190_s15, %s191_s16  }
  0x23   :  { %183 = dma.done.wait [#allocation3], 16  }
  0x24   :  { %184 = vsyncadd [#allocation3], 4294967280 }
  0x25   :  { %185 = dma.done.wait [#allocation6], 512  }
  0x26   :  { %186 = vsyncadd [#allocation6], 4294966784  ;;  %v54_v0 = vld [vmem:[#allocation5] sm:$0xff]  ;;  %v56_v1 = vld [vmem:[#allocation7] sm:$0xff]  ;;  %s194_s0 = smov 126   ;;  %s195_s2 = smov [#allocation8]  }
  0x27   :  { %v55_v2 = vld [vmem:[#allocation5 + $0x8] sm:$0xff]  ;;  %v58_v3 = vsub.f32 %v54_v0, %v56_v1  ;;  %v57_v4 = vld [vmem:[#allocation7 + $0x8] sm:$0xff]  ;;  %s85_s29 = sshll.u32 %s195_s2, 4  ;;  %s86_s29 = int_to_ptr.vmem [resolvable:$true] %s85_s29 }
  0x28   :  { %v59_v5 = vsub.f32 %v55_v2, %v57_v4  ;;  %v95_v11 = vld [vmem:[#allocation2] ss:$0 sm:$0xff]  ;;  %s163_s30 = scalar_lea.vmem %s86_s29, 128  ;;  %p168_p2 = scmp.lt.s32.totalorder %s86_s29, %s86_s29 }
  0x29   :  { %60 = vrot.lane.b32.xlu0 %v58_v3, %s194_s0  ;;  %p164_p1 = scmp.ne.s32.totalorder %s86_s29, %s163_s30  ;;  %p169_p3 = scmp.lt.s32.totalorder %s163_s30, %s163_s30 }
  0x2b   :  { %p170_p4 = por %p169_p3, %p168_p2 }
  0x2d   :  { %62 = vrot.lane.b32.xlu0 %v59_v5, %s194_s0  ;;  %p171_p5 = pnand %p170_p4, %p164_p1 }
  0x9b   :  { %v61_v6 = vpop.permute.xlu0 %60 }
  0x9c   :  { %v64_v7 = vsub.f32 %v61_v6, %v58_v3 }
  0x9e   :  { %v66_v9 = vand.u32 2147483647, %v64_v7 }
  0x9f   :  { %v63_v8 = vpop.permute.xlu0 %62 }
  0xa0   :  { %v65_v10 = vsub.f32 %v63_v8, %v59_v5  ;;  %v75_v13 = vmul.f32 %v95_v11, %v66_v9 }
  0xa2   :  { %v67_v12 = vand.u32 2147483647, %v65_v10 }
  0xa4   :  { %v76_v14 = vmul.f32 %v95_v11, %v67_v12 }
  0xa6   :  { %v77_v15 = vadd.f32 %v76_v14, %v75_v13 }
  0xa8   :  { %78 = vst [vmem:[#allocation8] sm:$0xff] %v77_v15 }
  0xa9   :  { %174 = shalt.err (!%p171_p5)
}
  0xaa   :  { %88 = dma.vmem_to_hbm [thread:$0]  %s86_s29, 128, %s231_s3, [#allocation4]  }
  0xab   :  { %187 = dma.done.wait [#allocation4], 128  }
  0xac   :  { %188 = vsyncadd [#allocation4], 4294967168 }
  0xad   :  { %92 = vsyncpa [#allocation3], 1 }
  0xae   :  { %93 = vsyncpa [#allocation6], 1 }
  0xaf   :  { %94 = vsyncpa [#allocation4], 1 }

</bundles_post_ra>
